<compile_context>
chip_gen: v5e
topology: v5e:2x2
jax: 0.10.0
libtpu: 0.0.40
codegen_flags: <defaults>
</compile_context>

<pallas_src>
import functools

import jax
import jax.numpy as jnp
from jax.experimental import pallas as pl
from jax.experimental.pallas import tpu as pltpu


# ---------------------------------------------------------------------------
# Tile / padding selection
# ---------------------------------------------------------------------------
def _round_up(x, m):
    return ((x + m - 1) // m) * m


def _choose_k(K):
    # Reduction axis: take the whole (padded) K when it fits -> single K step.
    Kp = _round_up(K, 128)
    tk = Kp if Kp <= 2048 else 1024
    Kp = _round_up(Kp, tk)
    return Kp, tk


def _choose_n(N):
    # Lane axis: 256-512 wide tiles fill the 256x256 MXU on v6e/v7x.
    Np = _round_up(N, 128)
    tn = Np if Np <= 512 else 512
    Np = _round_up(Np, tn)
    return Np, tn


def _choose_m(M):
    # Sublane axis: up to 256, but keep >= 2 M-blocks so both v7x TensorCores
    # get work via the "parallel" grid dimension.
    Mp = _round_up(M, 8)
    tm = min(256, Mp)
    if Mp // tm < 2 and Mp >= 256:
        tm = 128
    Mp = _round_up(Mp, tm)
    return Mp, tm


# ---------------------------------------------------------------------------
# Pallas kernel: tiled matmul + fused bias, accumulating into the resident
# output block (no scratch accumulator).
# ---------------------------------------------------------------------------
def _linear_kernel(x_ref, w_ref, b_ref, o_ref):
    # x_ref: (tm, tk) bf16   w_ref: (tk, tn) bf16   b_ref: (1, tn) f32
    # o_ref: (tm, tn) f32 — resident across the K axis (index_map ignores k).
    @pl.when(pl.program_id(2) == 0)
    def _init():
        # Fold the bias in once instead of a broadcast-add per K step.
        o_ref[...] = jnp.broadcast_to(b_ref[...], o_ref.shape)

    o_ref[...] += jnp.dot(
        x_ref[...], w_ref[...], preferred_element_type=jnp.float32
    )


@functools.partial(jax.jit, static_argnames=("N", "K", "tk", "tn"))
def _linear_call(x, w_bf, b_f32, *, N, K, tk, tn):
    """z = x @ W + b with pre-padded/cast bf16 W and f32 (1, Np) bias."""
    M = x.shape[0]
    Kp, Np = w_bf.shape
    Mp, tm = _choose_m(M)

    # Only x is padded/cast per call (and only when its shape requires it).
    x_p = x if (Mp == M and Kp == K) else jnp.pad(x, ((0, Mp - M), (0, Kp - K)))
    x_bf = x_p.astype(jnp.bfloat16)

    grid = (Mp // tm, Np // tn, Kp // tk)

    cost = pl.CostEstimate(
        flops=2 * Mp * Np * Kp,
        transcendentals=0,
        # Account for operand re-reads across the j / i grid axes.
        bytes_accessed=(
            (Np // tn) * x_bf.size * 2
            + (Mp // tm) * w_bf.size * 2
            + b_f32.size * 4
            + Mp * Np * 4
        ),
    )

    out = pl.pallas_call(
        _linear_kernel,
        out_shape=jax.ShapeDtypeStruct((Mp, Np), jnp.float32),
        grid_spec=pltpu.PrefetchScalarGridSpec(
            num_scalar_prefetch=0,
            grid=grid,
            in_specs=[
                pl.BlockSpec((tm, tk), lambda i, j, k: (i, k)),
                pl.BlockSpec((tk, tn), lambda i, j, k: (k, j)),
                # Bias tile depends only on j -> resident across the K axis.
                pl.BlockSpec((1, tn), lambda i, j, k: (0, j)),
            ],
            out_specs=pl.BlockSpec((tm, tn), lambda i, j, k: (i, j)),
        ),
        compiler_params=pltpu.CompilerParams(
            dimension_semantics=("parallel", "parallel", "arbitrary"),
        ),
        cost_estimate=cost,
    )(x_bf, w_bf, b_f32)

    return out[:M, :N]


# ---------------------------------------------------------------------------
# Model builder: pad/cast W and b ONCE (build time), not per call.
# ---------------------------------------------------------------------------
def make_linear_model(W, b):
    K, N = W.shape
    Kp, tk = _choose_k(K)
    Np, tn = _choose_n(N)
    W_bf = jnp.pad(W, ((0, Kp - K), (0, Np - N))).astype(jnp.bfloat16)
    b_f32 = jnp.pad(b, ((0, Np - N),)).reshape(1, Np).astype(jnp.float32)

    def model(x):
        return _linear_call(x, W_bf, b_f32, N=N, K=K, tk=tk, tn=tn)

    return model


# ---------------------------------------------------------------------------
# `function` module equivalent: forward(model, x) -> model(x)
# ---------------------------------------------------------------------------
def function_forward(model, x):
    z = model(x)
    return z


if __name__ == "__main__":
    # batch=256, in=512, out=256 -> tiles tm=128, tk=512 (full K), tn=256;
    # grid (2, 1, 1): one dot per output tile, both v7x TensorCores busy.
    B, K, N = 256, 512, 256
    key = jax.random.PRNGKey(0)
    kx, kw, kb = jax.random.split(key, 3)

    x = jax.random.normal(kx, (B, K), dtype=jnp.float32)
    # Deterministic in-script "model" parameters (synthetic, not a checkpoint).
    W = jax.random.normal(kw, (K, N), dtype=jnp.float32) * 0.02
    bias = jax.random.normal(kb, (N,), dtype=jnp.float32) * 0.01

    # The `model` passed into `function.forward`: a Pallas-backed linear layer.
    model = make_linear_model(W, bias)

    z = function_forward(model, x)
    jax.block_until_ready(z)

    # Reference matches the kernel's numerics (bf16 operands, f32 accumulate).
    z_ref = (
        jnp.dot(
            x.astype(jnp.bfloat16),
            W.astype(jnp.bfloat16),
            preferred_element_type=jnp.float32,
        )
        + bias
    )
    assert z.shape == (B, N)
    assert jnp.allclose(z, z_ref, atol=1e-2, rtol=1e-2), "mismatch vs reference"

    print("KERNEL_OK")
</pallas_src>

<mosaic_0001>
module attributes {stable_mosaic.version = 11 : i64} {
  func.func @_linear_kernel(%arg0: i32, %arg1: i32, %arg2: i32, %arg3: memref<128x512xbf16, #tpu.memory_space<vmem>>, %arg4: memref<512x256xbf16, #tpu.memory_space<vmem>>, %arg5: memref<1x256xf32, #tpu.memory_space<vmem>>, %arg6: memref<128x256xf32, #tpu.memory_space<vmem>>) attributes {dimension_semantics = [#tpu.dimension_semantics<parallel>, #tpu.dimension_semantics<parallel>, #tpu.dimension_semantics<arbitrary>], iteration_bounds = array<i64: 2, 1, 1>, scalar_prefetch = 0 : i64, scratch_operands = 0 : i64, tpu.core_type = #tpu.core_type<tc>, window_params = [{transform_indices = @transform_0, window_bounds = array<i64: 128, 512>}, {transform_indices = @transform_1, window_bounds = array<i64: 512, 256>}, {transform_indices = @transform_2, window_bounds = array<i64: 1, 256>}, {transform_indices = @transform_3, window_bounds = array<i64: 128, 256>}]} {
    %c0_i32 = arith.constant 0 : i32
    %0 = arith.cmpi eq, %arg2, %c0_i32 : i32
    %1 = arith.extui %0 : i1 to i32
    %c0_i32_0 = arith.constant 0 : i32
    %2 = arith.cmpi ne, %1, %c0_i32_0 : i32
    scf.if %2 {
      %c0_8 = arith.constant 0 : index
      %c0_9 = arith.constant 0 : index
      %9 = vector.load %arg5[%c0_8, %c0_9] : memref<1x256xf32, #tpu.memory_space<vmem>>, vector<1x256xf32>
      %10 = vector.shape_cast %9 : vector<1x256xf32> to vector<1x256xf32>
      %11 = vector.broadcast %10 : vector<1x256xf32> to vector<128x256xf32>
      %c0_10 = arith.constant 0 : index
      %c0_11 = arith.constant 0 : index
      %12 = vector.load %arg6[%c0_10, %c0_11] : memref<128x256xf32, #tpu.memory_space<vmem>>, vector<128x256xf32>
      tpu.vector_store %arg6[%c0_10, %c0_11], %11 {strides = array<i32>} : memref<128x256xf32, #tpu.memory_space<vmem>>, vector<128x256xf32>,
    } else {
    }
    %c0 = arith.constant 0 : index
    %c0_1 = arith.constant 0 : index
    %3 = vector.load %arg6[%c0, %c0_1] : memref<128x256xf32, #tpu.memory_space<vmem>>, vector<128x256xf32>
    %c0_2 = arith.constant 0 : index
    %c0_3 = arith.constant 0 : index
    %4 = vector.load %arg3[%c0_2, %c0_3] : memref<128x512xbf16, #tpu.memory_space<vmem>>, vector<128x512xbf16>
    %c0_4 = arith.constant 0 : index
    %c0_5 = arith.constant 0 : index
    %5 = vector.load %arg4[%c0_4, %c0_5] : memref<512x256xbf16, #tpu.memory_space<vmem>>, vector<512x256xbf16>
    %cst = arith.constant dense<0.000000e+00> : vector<128x256xf32>
    %6 = tpu.matmul %4, %5, %cst {dimension_numbers = #tpu.dot_dimension_numbers<[1], [0], [0], [1], [0, 0, 1, 1], [], []>} : vector<128x512xbf16>, vector<512x256xbf16>, vector<128x256xf32> -> vector<128x256xf32>
    %7 = arith.addf %3, %6 : vector<128x256xf32>
    %c0_6 = arith.constant 0 : index
    %c0_7 = arith.constant 0 : index
    %8 = vector.load %arg6[%c0_6, %c0_7] : memref<128x256xf32, #tpu.memory_space<vmem>>, vector<128x256xf32>
    tpu.vector_store %arg6[%c0_6, %c0_7], %7 {strides = array<i32>} : memref<128x256xf32, #tpu.memory_space<vmem>>, vector<128x256xf32>,
    return
  }
  func.func @transform_0(%arg0: i32, %arg1: i32, %arg2: i32) -> (i32, i32) {
    %c0_i32 = arith.constant 0 : i32
    return %arg0, %arg2 : i32, i32
  }
  func.func @transform_1(%arg0: i32, %arg1: i32, %arg2: i32) -> (i32, i32) {
    %c0_i32 = arith.constant 0 : i32
    return %arg2, %arg1 : i32, i32
  }
  func.func @transform_2(%arg0: i32, %arg1: i32, %arg2: i32) -> (i32, i32) {
    %c0_i32 = arith.constant 0 : i32
    %c0_i32_0 = arith.constant 0 : i32
    return %c0_i32, %arg1 : i32, i32
  }
  func.func @transform_3(%arg0: i32, %arg1: i32, %arg2: i32) -> (i32, i32) {
    %c0_i32 = arith.constant 0 : i32
    return %arg0, %arg1 : i32, i32
  }
}

</mosaic_0001>

<bundles_post_ra>
// kernel: _linear_call.1
= control target key start
LH: loop header
LB: loop body
LE: loop exit
PB: predicated region body
PF: predicated region fallthrough
CT: control target
= control target key end

     0   :  { %8 = vsyncpa [#allocation3], 0  ;;  %s2928_s0 = inlined_call_operand.vmem [shape: bf16[256,512], index: 0, kind: input, shape index: {}]   ;;  %s2929_s1 = inlined_call_operand.vmem [shape: bf16[512,256], index: 1, kind: input, shape index: {}]   ;;  %s2930_s2 = inlined_call_operand.vmem [shape: f32[1,256], index: 2, kind: input, shape index: {}]   ;;  %s2931_s3 = inlined_call_operand.hbm [shape: f32[256,256], index: 3, kind: output, shape index: {}]  }
   0x1   :  { %10 = vsyncpa [#allocation3 + $0x1], 0  ;;  %s2172_s12 = smov 0   ;;  %s2174_s13 = smov 0  }
   0x2   :  { %s2176_s14 = smov 0   ;;  %s2178_s15 = smov 0  }
   0x3   :  { %s2180_s16 = smov 0   ;;  %s2182_s17 = smov 0  }
   0x4 LB: > { %s1513_s18 = sadd.s32 4294967295, %s2148_s17   ;;  %s1514_s19 = sadd.s32 4294967294, %s2148_s17   ;;  %s2148_s17 = sphi %s2182_s17, %s16_s17   ;;  %s2144_s16 = sphi %s2180_s16, %s2938_s16   ;;  %s2140_s15 = sphi %s2178_s15, %s2937_s15   ;;  %s2136_s14 = sphi %s2176_s14, %s2936_s14   ;;  %s2132_s13 = sphi %s2174_s13, %s2935_s13   ;;  %s2128_s12 = sphi %s2172_s12, %s2934_s12  }
   0x5   : > { %s35_s20 = sadd.s32 1, %s2144_s16  ;;  %s126_s21 = sadd.s32 1, %s2136_s14 }
   0x6   : > { %p37_p0 = scmp.ge.s32.totalorder %s35_s20, 2  ;;  %p136_p1 = scmp.ne.s32.totalorder %s2136_s14, %s2132_s13 }
   0x7   : > { %p137_p2 = scmp.eq.s32.totalorder %s1513_s18, 1  ;;  %p142_p3 = scmp.ne.s32.totalorder %s2132_s13, %s2128_s12 }
   0x8   : > { %s2940_s20 = smov (%p37_p0, %s35_s20), 0  ;;  %p143_p5 = scmp.eq.s32.totalorder %s1514_s19, 1 }
   0x9   : > { %p2212_p4 = por %p137_p2, %p136_p1  ;;  %s121_s23 = ssub.s32 %s2144_s16, %s2940_s20 }
   0xa   : > { %p1519_p6 = scmp.ge.s32.totalorder %s2148_s17, 1  ;;  %p124_p7 = scmp.eq.s32.totalorder %s121_s23, 0 }
   0xb   : > { %p2219_p8 = por %p143_p5, %p142_p3  ;;  %p199_p9 = scmp.lt.s32.totalorder %s2148_s17, 3 }
   0xc   : > { %s2225_s25 = scalar_select %p124_p7, %s2136_s14, %s126_s21  }
   0xd   : > { %p200_p10 = pnand %p1519_p6, %p199_p9 }
   0xe   : > { %s1521_s7 = sshll.u32 (!%p200_p10), %s2140_s15, 4  ;;  %s2012_s27 = sshll.u32 (!%p200_p10), %s2140_s15, 8 }
   0xf   : > { %203 = sbr.rel (%p200_p10) target bundleno = 446 (0x1be), region = 32  ;;  %p244_p11 = scmp.lt.s32.totalorder (!%p200_p10), %s1521_s7, 31 }
  0x10   : > { %s1394_s4 = scalar_lea.hbm (!%p200_p10), %s2931_s3, %s2012_s27  ;;  %s2090_s11 = scalar_lea.hbm (!%p200_p10), %s2931_s3, 512 }
  0x11   : > { %s1397_s5 = sshll.u32 (!%p200_p10), %s1394_s4, 4  ;;  %s1398_s5 = int_to_ptr.hbm [resolvable:$true] %s1397_s5 }
  0x12   : > { %s2084_s6 = sshra.s32 (!%p200_p10), %s1398_s5, 4  ;;  %s2085_s6 = int_to_ptr.hbm [resolvable:$true] %s2084_s6 }
  0x13   : > { %s2086_s8 = scalar_lea.hbm (!%p200_p10), %s2085_s6, 256  ;;  %p2091_p1 = scmp.lt.s32.totalorder (!%p200_p10), %s2085_s6, %s2931_s3 }
  0x14   : > { %v1710_v0 = vld [vmem:[%s2929_s1 + $0x70] sm:$0xf]  ;;  %v1962_v1 = vld [vmem:[%s2929_s1 + $0x74] sm:$0xf0]  ;;  %v1702_v11 = vld [vmem:[%s2929_s1 + $0x60] sm:$0xf]  ;;  %p2087_p12 = scmp.ne.s32.totalorder %s2085_s6, %s2086_s8  ;;  %p2092_p2 = scmp.lt.s32.totalorder %s2090_s11, %s2086_s8 }
  0x15   : > { %v1774_v2 = vld [vmem:[%s2929_s1 + $0xf0] sm:$0xf]  ;;  %v1711_v3 = vor.u32 %v1962_v1, %v1710_v0  ;;  %v1978_v4 = vld [vmem:[%s2929_s1 + $0xf4] sm:$0xf0]  ;;  %v1960_v13 = vld [vmem:[%s2929_s1 + $0x64] sm:$0xf0] }
  0x16   : > { %v1838_v5 = vld [vmem:[%s2929_s1 + $0x170] sm:$0xf]  ;;  %v1994_v6 = vld [vmem:[%s2929_s1 + $0x174] sm:$0xf0]  ;;  %v1775_v7 = vor.u32 %v1978_v4, %v1774_v2  ;;  %v1766_v14 = vld [vmem:[%s2929_s1 + $0xe0] sm:$0xf]  ;;  %v1703_v16 = vor.u32 %v1960_v13, %v1702_v11  ;;  %p2088_p13 = pnand %p2087_p12, %p2212_p4  ;;  %p2093_p3 = por %p2092_p2, %p2091_p1 }
  0x17   : > { %v1839_v8 = vor.u32 %v1994_v6, %v1838_v5  ;;  %v1902_v9 = vld [vmem:[%s2929_s1 + $0x1f0] sm:$0xf]  ;;  %v2010_v10 = vld [vmem:[%s2929_s1 + $0x1f4] sm:$0xf0]  ;;  %923 = vmatpush.bf16.msra.mxu0 %v1711_v3  ;;  %v1976_v15 = vld [vmem:[%s2929_s1 + $0xe4] sm:$0xf0] }
  0x18   : > { %v1903_v12 = vor.u32 %v2010_v10, %v1902_v9  ;;  %972 = vmatpush.bf16.msra.mxu1 %v1775_v7  ;;  %v1767_v17 = vor.u32 %v1976_v15, %v1766_v14  ;;  %v1830_v18 = vld [vmem:[%s2929_s1 + $0x160] sm:$0xf]  ;;  %v1992_v19 = vld [vmem:[%s2929_s1 + $0x164] sm:$0xf0]  ;;  %v1694_v23 = vld [vmem:[%s2929_s1 + $0x50] sm:$0xf]  ;;  %p2089_p0 = pneg %p2088_p13 }
  0x19   : > { %1021 = vmatpush.bf16.msra.mxu2 %v1839_v8  ;;  %v1894_v20 = vld [vmem:[%s2929_s1 + $0x1e0] sm:$0xf]  ;;  %v1831_v21 = vor.u32 %v1992_v19, %v1830_v18  ;;  %v2008_v22 = vld [vmem:[%s2929_s1 + $0x1e4] sm:$0xf0]  ;;  %v1958_v24 = vld [vmem:[%s2929_s1 + $0x54] sm:$0xf0] }
  0x1a   : > { %1070 = vmatpush.bf16.msra.mxu3 %v1903_v12  ;;  %v1895_v25 = vor.u32 %v2008_v22, %v1894_v20  ;;  %v1758_v26 = vld [vmem:[%s2929_s1 + $0xd0] sm:$0xf]  ;;  %v1974_v27 = vld [vmem:[%s2929_s1 + $0xd4] sm:$0xf0]  ;;  %v1695_v29 = vor.u32 %v1958_v24, %v1694_v23  ;;  %v1686_v35 = vld [vmem:[%s2929_s1 + $0x40] sm:$0xf]  ;;  %p2094_p5 = pnand %p2093_p3, %p2089_p0 }
  0x1b   : > { %v1822_v28 = vld [vmem:[%s2929_s1 + $0x150] sm:$0xf]  ;;  %924 = vmatpush.bf16.msra.mxu0 %v1703_v16  ;;  %v1990_v30 = vld [vmem:[%s2929_s1 + $0x154] sm:$0xf0]  ;;  %v1759_v33 = vor.u32 %v1974_v27, %v1758_v26  ;;  %v1956_v36 = vld [vmem:[%s2929_s1 + $0x44] sm:$0xf0] }
  0x1c   : > { %v1886_v31 = vld [vmem:[%s2929_s1 + $0x1d0] sm:$0xf]  ;;  %v2006_v32 = vld [vmem:[%s2929_s1 + $0x1d4] sm:$0xf0]  ;;  %973 = vmatpush.bf16.msra.mxu1 %v1767_v17  ;;  %v1823_v34 = vor.u32 %v1990_v30, %v1822_v28  ;;  %v1750_v37 = vld [vmem:[%s2929_s1 + $0xc0] sm:$0xf]  ;;  %v1687_v44 = vor.u32 %v1956_v36, %v1686_v35 }
  0x1d   : > { %1022 = vmatpush.bf16.msra.mxu2 %v1831_v21  ;;  %v1887_v38 = vor.u32 %v2006_v32, %v1886_v31  ;;  %v1972_v39 = vld [vmem:[%s2929_s1 + $0xc4] sm:$0xf0]  ;;  %v1814_v40 = vld [vmem:[%s2929_s1 + $0x140] sm:$0xf]  ;;  %v1678_v47 = vld [vmem:[%s2929_s1 + $0x30] sm:$0xf] }
  0x1e   : > { %1071 = vmatpush.bf16.msra.mxu3 %v1895_v25  ;;  %v1988_v41 = vld [vmem:[%s2929_s1 + $0x144] sm:$0xf0]  ;;  %v1878_v42 = vld [vmem:[%s2929_s1 + $0x1c0] sm:$0xf]  ;;  %v1751_v45 = vor.u32 %v1972_v39, %v1750_v37  ;;  %v1954_v48 = vld [vmem:[%s2929_s1 + $0x34] sm:$0xf0] }
  0x1f   : > { %v2004_v43 = vld [vmem:[%s2929_s1 + $0x1c4] sm:$0xf0]  ;;  %925 = vmatpush.bf16.msra.mxu0 %v1695_v29  ;;  %v1815_v46 = vor.u32 %v1988_v41, %v1814_v40  ;;  %v1742_v49 = vld [vmem:[%s2929_s1 + $0xb0] sm:$0xf]  ;;  %v1970_v51 = vld [vmem:[%s2929_s1 + $0xb4] sm:$0xf0]  ;;  %v1679_v56 = vor.u32 %v1954_v48, %v1678_v47 }
  0x20   : > { %974 = vmatpush.bf16.msra.mxu1 %v1759_v33  ;;  %v1879_v50 = vor.u32 %v2004_v43, %v1878_v42  ;;  %v1806_v52 = vld [vmem:[%s2929_s1 + $0x130] sm:$0xf]  ;;  %v1986_v53 = vld [vmem:[%s2929_s1 + $0x134] sm:$0xf0]  ;;  %v1743_v57 = vor.u32 %v1970_v51, %v1742_v49  ;;  %v1670_v59 = vld [vmem:[%s2929_s1 + $0x20] sm:$0xf] }
  0x21   : > { %1023 = vmatpush.bf16.msra.mxu2 %v1823_v34  ;;  %v1870_v54 = vld [vmem:[%s2929_s1 + $0x1b0] sm:$0xf]  ;;  %v2002_v55 = vld [vmem:[%s2929_s1 + $0x1b4] sm:$0xf0]  ;;  %v1807_v58 = vor.u32 %v1986_v53, %v1806_v52  ;;  %v1952_v60 = vld [vmem:[%s2929_s1 + $0x24] sm:$0xf0] }
  0x22   : > { %1072 = vmatpush.bf16.msra.mxu3 %v1887_v38  ;;  %v1734_v61 = vld [vmem:[%s2929_s1 + $0xa0] sm:$0xf]  ;;  %v1871_v62 = vor.u32 %v2002_v55, %v1870_v54  ;;  %v1968_v63 = vld [vmem:[%s2929_s1 + $0xa4] sm:$0xf0]  ;;  %v1671_v4 = vor.u32 %v1952_v60, %v1670_v59  ;;  %v1662_v5 = vld [vmem:[%s2929_s1 + $0x10] sm:$0xf] }
  0x23   : > { %926 = vmatpush.bf16.msra.mxu0 %v1687_v44  ;;  %v1798_v0 = vld [vmem:[%s2929_s1 + $0x120] sm:$0xf]  ;;  %v1984_v1 = vld [vmem:[%s2929_s1 + $0x124] sm:$0xf0]  ;;  %v1950_v6 = vld [vmem:[%s2929_s1 + $0x14] sm:$0xf0]  ;;  %v1735_v7 = vor.u32 %v1968_v63, %v1734_v61 }
  0x24   : > { %975 = vmatpush.bf16.msra.mxu1 %v1751_v45  ;;  %v1862_v2 = vld [vmem:[%s2929_s1 + $0x1a0] sm:$0xf]  ;;  %v2000_v3 = vld [vmem:[%s2929_s1 + $0x1a4] sm:$0xf0]  ;;  %v1799_v8 = vor.u32 %v1984_v1, %v1798_v0  ;;  %v1726_v9 = vld [vmem:[%s2929_s1 + $0x90] sm:$0xf]  ;;  %v1663_v17 = vor.u32 %v1950_v6, %v1662_v5 }
  0x25   : > { %1024 = vmatpush.bf16.msra.mxu2 %v1815_v46  ;;  %v1966_v10 = vld [vmem:[%s2929_s1 + $0x94] sm:$0xf0]  ;;  %v1790_v11 = vld [vmem:[%s2929_s1 + $0x110] sm:$0xf]  ;;  %v1863_v12 = vor.u32 %v2000_v3, %v1862_v2  ;;  %v1654_v16 = vld [vmem:[%s2929_s1] sm:$0xf] }
  0x26   : > { %1073 = vmatpush.bf16.msra.mxu3 %v1879_v50  ;;  %v1982_v13 = vld [vmem:[%s2929_s1 + $0x114] sm:$0xf0]  ;;  %v1854_v14 = vld [vmem:[%s2929_s1 + $0x190] sm:$0xf]  ;;  %v1948_v18 = vld [vmem:[%s2929_s1 + $0x4] sm:$0xf0]  ;;  %v1727_v21 = vor.u32 %v1966_v10, %v1726_v9 }
  0x27   : > { %927 = vmatpush.bf16.msra.mxu0 %v1679_v56  ;;  %v1998_v15 = vld [vmem:[%s2929_s1 + $0x194] sm:$0xf0]  ;;  %v1718_v19 = vld [vmem:[%s2929_s1 + $0x80] sm:$0xf]  ;;  %v1964_v20 = vld [vmem:[%s2929_s1 + $0x84] sm:$0xf0]  ;;  %v1791_v22 = vor.u32 %v1982_v13, %v1790_v11  ;;  %v1655_v31 = vor.u32 %v1948_v18, %v1654_v16 }
  0x28   : > { %976 = vmatpush.bf16.msra.mxu1 %v1743_v57  ;;  %v1782_v23 = vld [vmem:[%s2929_s1 + $0x100] sm:$0xf]  ;;  %v1980_v24 = vld [vmem:[%s2929_s1 + $0x104] sm:$0xf0]  ;;  %s2942_s7 = smov (!%p244_p11, %s1521_s7), 31  ;;  %v1855_v25 = vor.u32 %v1998_v15, %v1854_v14  ;;  %v1719_v35 = vor.u32 %v1964_v20, %v1718_v19 }
  0x29   : > { %1025 = vmatpush.bf16.msra.mxu2 %v1807_v58  ;;  %v1846_v26 = vld [vmem:[%s2929_s1 + $0x180] sm:$0xf]  ;;  %v1996_v27 = vld [vmem:[%s2929_s1 + $0x184] sm:$0xf0]  ;;  %v1993_v28 = vld [vmem:[%s2929_s1 + $0x174] sm:$0xf]  ;;  %v1783_v36 = vor.u32 %v1980_v24, %v1782_v23 }
  0x2a   : > { %1074 = vmatpush.bf16.msra.mxu3 %v1871_v62  ;;  %s1914_s18 = sshll.u32 %s2942_s7, 4  ;;  %v1840_v29 = vld [vmem:[%s2929_s1 + $0x178] sm:$0xf0]  ;;  %v2009_v30 = vld [vmem:[%s2929_s1 + $0x1f4] sm:$0xf]  ;;  %v1847_v43 = vor.u32 %v1996_v27, %v1846_v26 }
  0x2b   : > { %928 = vmatpush.bf16.msra.mxu0 %v1671_v4  ;;  %s2432_s29 = scalar_lea.vmem %s2928_s0, %s1914_s18  ;;  %v1904_v32 = vld [vmem:[%s2929_s1 + $0x1f8] sm:$0xf0]  ;;  %v1961_v33 = vld [vmem:[%s2929_s1 + $0x74] sm:$0xf]  ;;  %v1991_v42 = vld [vmem:[%s2929_s1 + $0x164] sm:$0xf]  ;;  %v1843_v47 = vor.u32 %v1993_v28, %v1840_v29 }
  0x2c   : > { %977 = vmatpush.bf16.msra.mxu1 %v1735_v7  ;;  %v1712_v34 = vld [vmem:[%s2929_s1 + $0x78] sm:$0xf0]  ;;  %v1526_v37 = vld [vmem:[%s2432_s29] sm:$0xf]  ;;  %v1917_v38 = vld [vmem:[%s2432_s29 + $0xc] sm:$0xf0]  ;;  %v1907_v51 = vor.u32 %v2009_v30, %v1904_v32 }
  0x2d   : > { %1026 = vmatpush.bf16.msra.mxu2 %v1799_v8  ;;  %v1915_v39 = vld [vmem:[%s2432_s29 + $0x4] sm:$0xf]  ;;  %v1977_v40 = vld [vmem:[%s2929_s1 + $0xf4] sm:$0xf]  ;;  %v1776_v41 = vld [vmem:[%s2929_s1 + $0xf8] sm:$0xf0]  ;;  %v2458_v48 = vor.u32 %v1917_v38, %v1526_v37  ;;  %v1715_v58 = vor.u32 %v1961_v33, %v1712_v34 }
  0x2e   : > { %1075 = vmatpush.bf16.msra.mxu3 %v1863_v12  ;;  %v1528_v44 = vld [vmem:[%s2432_s29 + $0x10] sm:$0xf0]  ;;  %v1534_v45 = vld [vmem:[%s2432_s29 + $0x8] sm:$0xf]  ;;  %v1918_v46 = vld [vmem:[%s2432_s29 + $0x14] sm:$0xf0]  ;;  %v1779_v59 = vor.u32 %v1977_v40, %v1776_v41 }
  0x2f   : > { %929 = vmatpush.bf16.msra.mxu0 %v1663_v17  ;;  %v1916_v49 = vld [vmem:[%s2432_s29 + $0xc] sm:$0xf]  ;;  %v1536_v50 = vld [vmem:[%s2432_s29 + $0x18] sm:$0xf0]  ;;  %v2465_v53 = vor.u32 %v1915_v39, %v1528_v44  ;;  %v2467_v54 = vor.u32 %v1918_v46, %v1534_v45  ;;  %v2007_v55 = vld [vmem:[%s2929_s1 + $0x1e4] sm:$0xf] }
  0x30   : > { %978 = vmatpush.bf16.msra.mxu1 %v1727_v21  ;;  %v1832_v52 = vld [vmem:[%s2929_s1 + $0x168] sm:$0xf0]  ;;  %v2475_v57 = vor.u32 %v1916_v49, %v1536_v50  ;;  %v1959_v61 = vld [vmem:[%s2929_s1 + $0x64] sm:$0xf]  ;;  %v1989_v3 = vld [vmem:[%s2929_s1 + $0x154] sm:$0xf] }
  0x31   : > { %1027 = vmatpush.bf16.msra.mxu2 %v1791_v22  ;;  %v1896_v56 = vld [vmem:[%s2929_s1 + $0x1e8] sm:$0xf0]  ;;  %v1835_v60 = vor.u32 %v1991_v42, %v1832_v52  ;;  %v1975_v0 = vld [vmem:[%s2929_s1 + $0xe4] sm:$0xf]  ;;  %v1824_v4 = vld [vmem:[%s2929_s1 + $0x158] sm:$0xf0] }
  0x32   : > { %1076 = vmatpush.bf16.msra.mxu3 %v1855_v25  ;;  %v1704_v62 = vld [vmem:[%s2929_s1 + $0x68] sm:$0xf0]  ;;  %v1899_v63 = vor.u32 %v2007_v55, %v1896_v56  ;;  %v2005_v5 = vld [vmem:[%s2929_s1 + $0x1d4] sm:$0xf]  ;;  %v1827_v7 = vor.u32 %v1989_v3, %v1824_v4  ;;  %v1888_v8 = vld [vmem:[%s2929_s1 + $0x1d8] sm:$0xf0] }
  0x33   : > { %930 = vmatpush.bf16.msra.mxu0 %v1655_v31  ;;  %v1768_v1 = vld [vmem:[%s2929_s1 + $0xe8] sm:$0xf0]  ;;  %v1707_v2 = vor.u32 %v1959_v61, %v1704_v62  ;;  %v1957_v9 = vld [vmem:[%s2929_s1 + $0x54] sm:$0xf]  ;;  %v1696_v10 = vld [vmem:[%s2929_s1 + $0x58] sm:$0xf0]  ;;  %v1891_v11 = vor.u32 %v2005_v5, %v1888_v8 }
  0x34   : > { %979 = vmatpush.bf16.msra.mxu1 %v1719_v35  ;;  %v1771_v6 = vor.u32 %v1975_v0, %v1768_v1  ;;  %v1973_v12 = vld [vmem:[%s2929_s1 + $0xd4] sm:$0xf]  ;;  %v1760_v13 = vld [vmem:[%s2929_s1 + $0xd8] sm:$0xf0]  ;;  %v1699_v14 = vor.u32 %v1957_v9, %v1696_v10  ;;  %v1542_v16 = vld [vmem:[%s2432_s29 + $0x20] sm:$0xf] }
  0x35   : > { %1028 = vmatpush.bf16.msra.mxu2 %v1783_v36  ;;  %v1763_v15 = vor.u32 %v1973_v12, %v1760_v13  ;;  %v1921_v17 = vld [vmem:[%s2432_s29 + $0x2c] sm:$0xf0]  ;;  %v1919_v18 = vld [vmem:[%s2432_s29 + $0x24] sm:$0xf]  ;;  %v1544_v19 = vld [vmem:[%s2432_s29 + $0x30] sm:$0xf0] }
  0x36   : > { %1077 = vmatpush.bf16.msra.mxu3 %v1847_v43  ;;  %931 = vmatmul.bf16.vlgmr.msra.gmra.mxu0 %v2458_v48  ;;  %v1550_v20 = vld [vmem:[%s2432_s29 + $0x28] sm:$0xf]  ;;  %v1922_v21 = vld [vmem:[%s2432_s29 + $0x34] sm:$0xf0]  ;;  %v1920_v22 = vld [vmem:[%s2432_s29 + $0x2c] sm:$0xf]  ;;  %v2525_v24 = vor.u32 %v1921_v17, %v1542_v16  ;;  %v2527_v25 = vor.u32 %v1919_v18, %v1544_v19 }
  0x37   : > { %980 = vmatmul.bf16.vlgmr.msra.gmra.mxu1 %v2465_v53  ;;  %1119 = vmatpush.bf16.msrb.mxu0 %v1715_v58  ;;  %v1552_v23 = vld [vmem:[%s2432_s29 + $0x38] sm:$0xf0]  ;;  %v2529_v26 = vor.u32 %v1922_v21, %v1550_v20  ;;  %v1987_v28 = vld [vmem:[%s2929_s1 + $0x144] sm:$0xf]  ;;  %v1816_v29 = vld [vmem:[%s2929_s1 + $0x148] sm:$0xf0] }
  0x38   : > { %1029 = vmatmul.bf16.vlgmr.msra.gmra.mxu2 %v2467_v54  ;;  %1168 = vmatpush.bf16.msrb.mxu1 %v1779_v59  ;;  %v2531_v27 = vor.u32 %v1920_v22, %v1552_v23  ;;  %v2003_v30 = vld [vmem:[%s2929_s1 + $0x1c4] sm:$0xf]  ;;  %v1819_v31 = vor.u32 %v1987_v28, %v1816_v29  ;;  %v1880_v32 = vld [vmem:[%s2929_s1 + $0x1c8] sm:$0xf0]  ;;  %v1558_v40 = vld [vmem:[%s2432_s29 + $0x40] sm:$0xf] }
  0x39   : > { %1217 = vmatpush.bf16.msrb.mxu2 %v1843_v47  ;;  %1078 = vmatmul.bf16.vlgmr.msra.gmra.mxu3 %v2475_v57  ;;  %v1955_v33 = vld [vmem:[%s2929_s1 + $0x44] sm:$0xf]  ;;  %v1688_v34 = vld [vmem:[%s2929_s1 + $0x48] sm:$0xf0]  ;;  %v1883_v35 = vor.u32 %v2003_v30, %v1880_v32  ;;  %v1925_v41 = vld [vmem:[%s2432_s29 + $0x4c] sm:$0xf0] }
  0x3a   : > { %1266 = vmatpush.bf16.msrb.mxu3 %v1907_v51  ;;  %v1691_v36 = vor.u32 %v1955_v33, %v1688_v34  ;;  %v1971_v37 = vld [vmem:[%s2929_s1 + $0xc4] sm:$0xf]  ;;  %v1752_v38 = vld [vmem:[%s2929_s1 + $0xc8] sm:$0xf0]  ;;  %v1560_v43 = vld [vmem:[%s2432_s29 + $0x50] sm:$0xf0]  ;;  %v2569_v49 = vor.u32 %v1925_v41, %v1558_v40 }
  0x3b   : > { %1120 = vmatpush.bf16.msrb.mxu0 %v1707_v2  ;;  %v1755_v39 = vor.u32 %v1971_v37, %v1752_v38  ;;  %v1923_v42 = vld [vmem:[%s2432_s29 + $0x44] sm:$0xf]  ;;  %v1566_v44 = vld [vmem:[%s2432_s29 + $0x48] sm:$0xf]  ;;  %v1926_v45 = vld [vmem:[%s2432_s29 + $0x54] sm:$0xf0] }
  0x3c   : > { %1169 = vmatpush.bf16.msrb.mxu1 %v1771_v6  ;;  %v1924_v46 = vld [vmem:[%s2432_s29 + $0x4c] sm:$0xf]  ;;  %v1568_v47 = vld [vmem:[%s2432_s29 + $0x58] sm:$0xf0]  ;;  %v2571_v50 = vor.u32 %v1923_v42, %v1560_v43  ;;  %v2573_v51 = vor.u32 %v1926_v45, %v1566_v44  ;;  %v1985_v55 = vld [vmem:[%s2929_s1 + $0x134] sm:$0xf] }
  0x3d   : > { %1218 = vmatpush.bf16.msrb.mxu2 %v1835_v60  ;;  %v2575_v52 = vor.u32 %v1924_v46, %v1568_v47  ;;  %v1808_v56 = vld [vmem:[%s2929_s1 + $0x138] sm:$0xf0]  ;;  %v2001_v58 = vld [vmem:[%s2929_s1 + $0x1b4] sm:$0xf]  ;;  %v1574_v4 = vld [vmem:[%s2432_s29 + $0x60] sm:$0xf] }
  0x3e   : > { %1267 = vmatpush.bf16.msrb.mxu3 %v1899_v63  ;;  %v1811_v59 = vor.u32 %v1985_v55, %v1808_v56  ;;  %v1872_v60 = vld [vmem:[%s2929_s1 + $0x1b8] sm:$0xf0]  ;;  %v1953_v61 = vld [vmem:[%s2929_s1 + $0x34] sm:$0xf]  ;;  %v1929_v5 = vld [vmem:[%s2432_s29 + $0x6c] sm:$0xf0] }
  0x3f   : > { %1121 = vmatpush.bf16.msrb.mxu0 %v1699_v14  ;;  %v1680_v62 = vld [vmem:[%s2929_s1 + $0x38] sm:$0xf0]  ;;  %v1875_v63 = vor.u32 %v2001_v58, %v1872_v60  ;;  %v1969_v1 = vld [vmem:[%s2929_s1 + $0xb4] sm:$0xf]  ;;  %v1927_v6 = vld [vmem:[%s2432_s29 + $0x64] sm:$0xf]  ;;  %v2613_v12 = vor.u32 %v1929_v5, %v1574_v4 }
  0x40   : > { %1170 = vmatpush.bf16.msrb.mxu1 %v1763_v15  ;;  %v1683_v0 = vor.u32 %v1953_v61, %v1680_v62  ;;  %v1744_v2 = vld [vmem:[%s2929_s1 + $0xb8] sm:$0xf0]  ;;  %v1582_v8 = vld [vmem:[%s2432_s29 + $0x68] sm:$0xf]  ;;  %v1930_v9 = vld [vmem:[%s2432_s29 + $0x74] sm:$0xf0] }
  0x41   : > { %1219 = vmatpush.bf16.msrb.mxu2 %v1827_v7  ;;  %v1747_v3 = vor.u32 %v1969_v1, %v1744_v2  ;;  %v1576_v7 = vld [vmem:[%s2432_s29 + $0x70] sm:$0xf0]  ;;  %v1928_v10 = vld [vmem:[%s2432_s29 + $0x6c] sm:$0xf]  ;;  %v2617_v14 = vor.u32 %v1930_v9, %v1582_v8  ;;  %v1983_v16 = vld [vmem:[%s2929_s1 + $0x124] sm:$0xf] }
  0x42   : > { %1268 = vmatpush.bf16.msrb.mxu3 %v1891_v11  ;;  %v1584_v11 = vld [vmem:[%s2432_s29 + $0x78] sm:$0xf0]  ;;  %v2615_v13 = vor.u32 %v1927_v6, %v1576_v7  ;;  %v1800_v17 = vld [vmem:[%s2929_s1 + $0x128] sm:$0xf0]  ;;  %v1999_v18 = vld [vmem:[%s2929_s1 + $0x1a4] sm:$0xf] }
  0x43   : > { %1122 = vmatpush.bf16.msrb.mxu0 %v1691_v36  ;;  %v2619_v15 = vor.u32 %v1928_v10, %v1584_v11  ;;  %v1803_v19 = vor.u32 %v1983_v16, %v1800_v17  ;;  %v1864_v20 = vld [vmem:[%s2929_s1 + $0x1a8] sm:$0xf0]  ;;  %v1951_v21 = vld [vmem:[%s2929_s1 + $0x24] sm:$0xf]  ;;  %v1590_v32 = vld [vmem:[%s2432_s29 + $0x80] sm:$0xf] }
  0x44   : > { %1171 = vmatpush.bf16.msrb.mxu1 %v1755_v39  ;;  %v1672_v22 = vld [vmem:[%s2929_s1 + $0x28] sm:$0xf0]  ;;  %v1867_v23 = vor.u32 %v1999_v18, %v1864_v20  ;;  %v1967_v29 = vld [vmem:[%s2929_s1 + $0xa4] sm:$0xf]  ;;  %v1933_v33 = vld [vmem:[%s2432_s29 + $0x8c] sm:$0xf0] }
  0x45   : > { %1220 = vmatpush.bf16.msrb.mxu2 %v1819_v31  ;;  %v1675_v28 = vor.u32 %v1951_v21, %v1672_v22  ;;  %v1736_v30 = vld [vmem:[%s2929_s1 + $0xa8] sm:$0xf0]  ;;  %v1931_v34 = vld [vmem:[%s2432_s29 + $0x84] sm:$0xf]  ;;  %v1598_v36 = vld [vmem:[%s2432_s29 + $0x88] sm:$0xf]  ;;  %v2657_v40 = vor.u32 %v1933_v33, %v1590_v32 }
  0x46   : > { %936 = vmatmul.bf16.gmra.mxu0 %v2525_v24  ;;  %1269 = vmatpush.bf16.msrb.mxu3 %v1883_v35  ;;  %v1739_v31 = vor.u32 %v1967_v29, %v1736_v30  ;;  %v1592_v35 = vld [vmem:[%s2432_s29 + $0x90] sm:$0xf0]  ;;  %v1934_v37 = vld [vmem:[%s2432_s29 + $0x94] sm:$0xf0]  ;;  %v1932_v38 = vld [vmem:[%s2432_s29 + $0x8c] sm:$0xf] }
  0x47   : > { %985 = vmatmul.bf16.gmra.mxu1 %v2527_v25  ;;  %1123 = vmatpush.bf16.msrb.mxu0 %v1683_v0  ;;  %v1600_v39 = vld [vmem:[%s2432_s29 + $0x98] sm:$0xf0]  ;;  %v2659_v41 = vor.u32 %v1931_v34, %v1592_v35  ;;  %v2661_v42 = vor.u32 %v1934_v37, %v1598_v36  ;;  %v1981_v44 = vld [vmem:[%s2929_s1 + $0x114] sm:$0xf]  ;;  %v1606_v0 = vld [vmem:[%s2432_s29 + $0xa0] sm:$0xf] }
  0x48   : > { %1034 = vmatmul.bf16.gmra.mxu2 %v2529_v26  ;;  %1172 = vmatpush.bf16.msrb.mxu1 %v1747_v3  ;;  %v2663_v43 = vor.u32 %v1932_v38, %v1600_v39  ;;  %v1792_v45 = vld [vmem:[%s2929_s1 + $0x118] sm:$0xf0]  ;;  %v1997_v46 = vld [vmem:[%s2929_s1 + $0x194] sm:$0xf]  ;;  %v1937_v1 = vld [vmem:[%s2432_s29 + $0xac] sm:$0xf0] }
  0x49   : > { %1083 = vmatmul.bf16.gmra.mxu3 %v2531_v27  ;;  %1221 = vmatpush.bf16.msrb.mxu2 %v1811_v59  ;;  %v1795_v47 = vor.u32 %v1981_v44, %v1792_v45  ;;  %v1856_v55 = vld [vmem:[%s2929_s1 + $0x198] sm:$0xf0]  ;;  %v1949_v56 = vld [vmem:[%s2929_s1 + $0x14] sm:$0xf]  ;;  %v1935_v2 = vld [vmem:[%s2432_s29 + $0xa4] sm:$0xf]  ;;  %v2701_v8 = vor.u32 %v1937_v1, %v1606_v0 }
  0x4a   : > { %1270 = vmatpush.bf16.msrb.mxu3 %v1875_v63  ;;  %v1664_v58 = vld [vmem:[%s2929_s1 + $0x18] sm:$0xf0]  ;;  %v1859_v59 = vor.u32 %v1997_v46, %v1856_v55  ;;  %v1965_v61 = vld [vmem:[%s2929_s1 + $0x94] sm:$0xf]  ;;  %v1614_v4 = vld [vmem:[%s2432_s29 + $0xa8] sm:$0xf] }
  0x4b   : > { %1124 = vmatpush.bf16.msrb.mxu0 %v1675_v28  ;;  %v1667_v60 = vor.u32 %v1949_v56, %v1664_v58  ;;  %v1728_v62 = vld [vmem:[%s2929_s1 + $0x98] sm:$0xf0]  ;;  %v1608_v3 = vld [vmem:[%s2432_s29 + $0xb0] sm:$0xf0]  ;;  %v1938_v5 = vld [vmem:[%s2432_s29 + $0xb4] sm:$0xf0] }
  0x4c   : > { %1173 = vmatpush.bf16.msrb.mxu1 %v1739_v31  ;;  %v1731_v63 = vor.u32 %v1965_v61, %v1728_v62  ;;  %v1936_v6 = vld [vmem:[%s2432_s29 + $0xac] sm:$0xf]  ;;  %v1616_v7 = vld [vmem:[%s2432_s29 + $0xb8] sm:$0xf0]  ;;  %v2703_v9 = vor.u32 %v1935_v2, %v1608_v3  ;;  %v2705_v10 = vor.u32 %v1938_v5, %v1614_v4  ;;  %v1979_v16 = vld [vmem:[%s2929_s1 + $0x104] sm:$0xf] }
  0x4d   : > { %1222 = vmatpush.bf16.msrb.mxu2 %v1803_v19  ;;  %v2707_v11 = vor.u32 %v1936_v6, %v1616_v7  ;;  %v1784_v17 = vld [vmem:[%s2929_s1 + $0x108] sm:$0xf0]  ;;  %v1995_v18 = vld [vmem:[%s2929_s1 + $0x184] sm:$0xf]  ;;  %v1622_v32 = vld [vmem:[%s2432_s29 + $0xc0] sm:$0xf] }
  0x4e   : > { %1271 = vmatpush.bf16.msrb.mxu3 %v1867_v23  ;;  %v1787_v19 = vor.u32 %v1979_v16, %v1784_v17  ;;  %v1848_v20 = vld [vmem:[%s2929_s1 + $0x188] sm:$0xf0]  ;;  %v1947_v21 = vld [vmem:[%s2929_s1 + $0x4] sm:$0xf]  ;;  %v1941_v33 = vld [vmem:[%s2432_s29 + $0xcc] sm:$0xf0] }
  0x4f   : > { %1125 = vmatpush.bf16.msrb.mxu0 %v1667_v60  ;;  %v1656_v22 = vld [vmem:[%s2929_s1 + $0x8] sm:$0xf0]  ;;  %v1851_v23 = vor.u32 %v1995_v18, %v1848_v20  ;;  %v1963_v29 = vld [vmem:[%s2929_s1 + $0x84] sm:$0xf]  ;;  %v1624_v35 = vld [vmem:[%s2432_s29 + $0xd0] sm:$0xf0]  ;;  %v2745_v44 = vor.u32 %v1941_v33, %v1622_v32 }
  0x50   : > { %1174 = vmatpush.bf16.msrb.mxu1 %v1731_v63  ;;  %v1659_v28 = vor.u32 %v1947_v21, %v1656_v22  ;;  %v1720_v30 = vld [vmem:[%s2929_s1 + $0x88] sm:$0xf0]  ;;  %v1939_v34 = vld [vmem:[%s2432_s29 + $0xc4] sm:$0xf]  ;;  %v1630_v36 = vld [vmem:[%s2432_s29 + $0xc8] sm:$0xf] }
  0x51   : > { %1223 = vmatpush.bf16.msrb.mxu2 %v1795_v47  ;;  %v1723_v31 = vor.u32 %v1963_v29, %v1720_v30  ;;  %v1942_v37 = vld [vmem:[%s2432_s29 + $0xd4] sm:$0xf0]  ;;  %v1940_v38 = vld [vmem:[%s2432_s29 + $0xcc] sm:$0xf]  ;;  %v1632_v39 = vld [vmem:[%s2432_s29 + $0xd8] sm:$0xf0]  ;;  %v2747_v45 = vor.u32 %v1939_v34, %v1624_v35 }
  0x52   : > { %1272 = vmatpush.bf16.msrb.mxu3 %v1859_v59  ;;  %v2749_v46 = vor.u32 %v1942_v37, %v1630_v36  ;;  %v2751_v47 = vor.u32 %v1940_v38, %v1632_v39  ;;  %v1638_v55 = vld [vmem:[%s2432_s29 + $0xe0] sm:$0xf]  ;;  %v1945_v56 = vld [vmem:[%s2432_s29 + $0xec] sm:$0xf0]  ;;  %v1943_v58 = vld [vmem:[%s2432_s29 + $0xe4] sm:$0xf] }
  0x53   : > { %1126 = vmatpush.bf16.msrb.mxu0 %v1659_v28  ;;  %v1640_v59 = vld [vmem:[%s2432_s29 + $0xf0] sm:$0xf0]  ;;  %v1646_v60 = vld [vmem:[%s2432_s29 + $0xe8] sm:$0xf]  ;;  %v1946_v61 = vld [vmem:[%s2432_s29 + $0xf4] sm:$0xf0]  ;;  %v2765_v0 = vor.u32 %v1945_v56, %v1638_v55 }
  0x54   : > { %1175 = vmatpush.bf16.msrb.mxu1 %v1723_v31  ;;  %v1944_v62 = vld [vmem:[%s2432_s29 + $0xec] sm:$0xf]  ;;  %v1648_v63 = vld [vmem:[%s2432_s29 + $0xf8] sm:$0xf0]  ;;  %v2767_v1 = vor.u32 %v1943_v58, %v1640_v59  ;;  %v2769_v2 = vor.u32 %v1946_v61, %v1646_v60  ;;  %s239_s29 = sand.u32 1, %s2132_s13  }
  0x55   : > { %1224 = vmatpush.bf16.msrb.mxu2 %v1787_v19  ;;  %v2771_v3 = vor.u32 %v1944_v62, %v1648_v63  ;;  %v2785_v7 = vld [vmem:[%s2930_s2] sm:$0x3]  ;;  %s1520_s23 = sshll.u32 %s239_s29, 8  ;;  %s1380_s15 = scalar_lea.sflag [#allocation3], %s239_s29 }
  0x56   : > { %941 = vmatmul.bf16.gmra.mxu0 %v2569_v49  ;;  %1273 = vmatpush.bf16.msrb.mxu3 %v1851_v23  ;;  %v2790_v18 = vperm.slane %v2785_v7, 0  ;;  %s2793_s26 = scalar_lea.vmem [#allocation2], %s1520_s23 }
  0x57   : > { %990 = vmatmul.bf16.gmra.mxu1 %v2571_v50  ;;  %s1395_s7 = sshll.u32 %s2793_s26, 4  ;;  %s1396_s7 = int_to_ptr.vmem [resolvable:$true] %s1395_s7 }
  0x58   : > { %1039 = vmatmul.bf16.gmra.mxu2 %v2573_v51 }
  0x59   : > { %1088 = vmatmul.bf16.gmra.mxu3 %v2575_v52 }
  0x66   : > { %946 = vmatmul.bf16.gmra.mxu0 %v2613_v12 }
  0x67   : > { %995 = vmatmul.bf16.gmra.mxu1 %v2615_v13 }
  0x68   : > { %1044 = vmatmul.bf16.gmra.mxu2 %v2617_v14 }
  0x69   : > { %1093 = vmatmul.bf16.gmra.mxu3 %v2619_v15 }
  0x76   : > { %951 = vmatmul.bf16.gmra.mxu0 %v2657_v40 }
  0x77   : > { %1000 = vmatmul.bf16.gmra.mxu1 %v2659_v41 }
  0x78   : > { %1049 = vmatmul.bf16.gmra.mxu2 %v2661_v42 }
  0x79   : > { %1098 = vmatmul.bf16.gmra.mxu3 %v2663_v43 }
  0x86   : > { %956 = vmatmul.bf16.gmra.mxu0 %v2701_v8 }
  0x87   : > { %1005 = vmatmul.bf16.gmra.mxu1 %v2703_v9 }
  0x88   : > { %1054 = vmatmul.bf16.gmra.mxu2 %v2705_v10 }
  0x89   : > { %1103 = vmatmul.bf16.gmra.mxu3 %v2707_v11 }
  0x96   : > { %961 = vmatmul.bf16.gmra.mxu0 %v2745_v44 }
  0x97   : > { %1010 = vmatmul.bf16.gmra.mxu1 %v2747_v45 }
  0x98   : > { %1059 = vmatmul.bf16.gmra.mxu2 %v2749_v46 }
  0x99   : > { %1108 = vmatmul.bf16.gmra.mxu3 %v2751_v47 }
  0xa6   : > { %966 = vmatmul.bf16.gmra.mxu0 %v2765_v0 }
  0xa7   : > { %1015 = vmatmul.bf16.gmra.mxu1 %v2767_v1 }
  0xa8   : > { %1064 = vmatmul.bf16.gmra.mxu2 %v2769_v2 }
  0xa9   : > { %1113 = vmatmul.bf16.gmra.mxu3 %v2771_v3 }
  0xb3   : > { %v932_v4 = vpop.f32.mrf.mxu0 }
  0xb4   : > { %v981_v5 = vpop.f32.mrf.mxu1 }
  0xb5   : > { %v982_v6 = vadd.f32 %v981_v5, %v932_v4 }
  0xb6   : > { %1127 = vmatmul.bf16.vlgmr.msrb.gmra.mxu0 %v2458_v48 }
  0xb7   : > { %1176 = vmatmul.bf16.vlgmr.msrb.gmra.mxu1 %v2465_v53 }
  0xb8   : > { %1225 = vmatmul.bf16.vlgmr.msrb.gmra.mxu2 %v2467_v54 }
  0xb9   : > { %1274 = vmatmul.bf16.vlgmr.msrb.gmra.mxu3 %v2475_v57 }
  0xbb   : > { %v1030_v16 = vpop.f32.mrf.mxu2  ;;  %v934_v19 = vpop.f32.mrf.mxu0 }
  0xbc   : > { %v1031_v17 = vadd.f32 %v1030_v16, %v982_v6  ;;  %v1079_v48 = vpop.f32.mrf.mxu3  ;;  %v983_v53 = vpop.f32.mrf.mxu1 }
  0xbd   : > { %v984_v57 = vadd.f32 %v983_v53, %v934_v19 }
  0xbe   : > { %v1080_v20 = vadd.f32 %v1079_v48, %v1031_v17 }
  0xc0   : > { %v1315_v54 = vadd.f32 %v1080_v20, %v2790_v18 }
  0xc2   : > { %1347 = vst [vmem:[%s2793_s26] sm:$0xff] %v1315_v54 }
  0xc3   : > { %v1032_v21 = vpop.f32.mrf.mxu2  ;;  %v937_v28 = vpop.f32.mrf.mxu0 }
  0xc4   : > { %v1033_v22 = vadd.f32 %v1032_v21, %v984_v57  ;;  %v1081_v23 = vpop.f32.mrf.mxu3  ;;  %v986_v29 = vpop.f32.mrf.mxu1 }
  0xc5   : > { %v987_v32 = vadd.f32 %v986_v29, %v937_v28 }
  0xc6   : > { %v1082_v30 = vadd.f32 %v1081_v23, %v1033_v22  ;;  %1132 = vmatmul.bf16.gmra.mxu0 %v2525_v24 }
  0xc7   : > { %1181 = vmatmul.bf16.gmra.mxu1 %v2527_v25 }
  0xc8   : > { %v1317_v31 = vadd.f32 %v1082_v30, %v2790_v18  ;;  %1230 = vmatmul.bf16.gmra.mxu2 %v2529_v26 }
  0xc9   : > { %1279 = vmatmul.bf16.gmra.mxu3 %v2531_v27 }
  0xca   : > { %1349 = vst [vmem:[%s2793_s26 + $0x10] sm:$0xff] %v1317_v31 }
  0xcb   : > { %v1035_v33 = vpop.f32.mrf.mxu2  ;;  %v939_v36 = vpop.f32.mrf.mxu0 }
  0xcc   : > { %v1036_v34 = vadd.f32 %v1035_v33, %v987_v32  ;;  %v1084_v35 = vpop.f32.mrf.mxu3  ;;  %v988_v37 = vpop.f32.mrf.mxu1 }
  0xcd   : > { %v989_v24 = vadd.f32 %v988_v37, %v939_v36 }
  0xce   : > { %v1085_v38 = vadd.f32 %v1084_v35, %v1036_v34 }
  0xd0   : > { %v1319_v39 = vadd.f32 %v1085_v38, %v2790_v18 }
  0xd2   : > { %1351 = vst [vmem:[%s2793_s26 + $0x20] sm:$0xff] %v1319_v39 }
  0xd3   : > { %v1037_v55 = vpop.f32.mrf.mxu2  ;;  %v942_v25 = vpop.f32.mrf.mxu0 }
  0xd4   : > { %v1038_v56 = vadd.f32 %v1037_v55, %v989_v24  ;;  %v1086_v58 = vpop.f32.mrf.mxu3  ;;  %v991_v59 = vpop.f32.mrf.mxu1 }
  0xd5   : > { %v992_v60 = vadd.f32 %v991_v59, %v942_v25 }
  0xd6   : > { %v1087_v26 = vadd.f32 %v1086_v58, %v1038_v56  ;;  %1137 = vmatmul.bf16.gmra.mxu0 %v2569_v49 }
  0xd7   : > { %1186 = vmatmul.bf16.gmra.mxu1 %v2571_v50 }
  0xd8   : > { %v1321_v27 = vadd.f32 %v1087_v26, %v2790_v18  ;;  %1235 = vmatmul.bf16.gmra.mxu2 %v2573_v51 }
  0xd9   : > { %1284 = vmatmul.bf16.gmra.mxu3 %v2575_v52 }
  0xda   : > { %1353 = vst [vmem:[%s2793_s26 + $0x30] sm:$0xff] %v1321_v27 }
  0xdb   : > { %v1040_v61 = vpop.f32.mrf.mxu2  ;;  %v944_v4 = vpop.f32.mrf.mxu0 }
  0xdc   : > { %v1041_v62 = vadd.f32 %v1040_v61, %v992_v60  ;;  %v1089_v63 = vpop.f32.mrf.mxu3  ;;  %v993_v5 = vpop.f32.mrf.mxu1 }
  0xdd   : > { %v994_v49 = vadd.f32 %v993_v5, %v944_v4 }
  0xde   : > { %v1090_v6 = vadd.f32 %v1089_v63, %v1041_v62 }
  0xe0   : > { %v1323_v16 = vadd.f32 %v1090_v6, %v2790_v18 }
  0xe2   : > { %1355 = vst [vmem:[%s2793_s26 + $0x40] sm:$0xff] %v1323_v16 }
  0xe3   : > { %v1042_v17 = vpop.f32.mrf.mxu2  ;;  %v947_v50 = vpop.f32.mrf.mxu0 }
  0xe4   : > { %v1043_v48 = vadd.f32 %v1042_v17, %v994_v49  ;;  %v1091_v19 = vpop.f32.mrf.mxu3  ;;  %v996_v53 = vpop.f32.mrf.mxu1 }
  0xe5   : > { %v997_v20 = vadd.f32 %v996_v53, %v947_v50 }
  0xe6   : > { %v1092_v51 = vadd.f32 %v1091_v19, %v1043_v48  ;;  %1142 = vmatmul.bf16.gmra.mxu0 %v2613_v12 }
  0xe7   : > { %1191 = vmatmul.bf16.gmra.mxu1 %v2615_v13 }
  0xe8   : > { %v1325_v52 = vadd.f32 %v1092_v51, %v2790_v18  ;;  %1240 = vmatmul.bf16.gmra.mxu2 %v2617_v14 }
  0xe9   : > { %1289 = vmatmul.bf16.gmra.mxu3 %v2619_v15 }
  0xea   : > { %1357 = vst [vmem:[%s2793_s26 + $0x50] sm:$0xff] %v1325_v52 }
  0xeb   : > { %v1045_v54 = vpop.f32.mrf.mxu2  ;;  %v949_v22 = vpop.f32.mrf.mxu0 }
  0xec   : > { %v1046_v57 = vadd.f32 %v1045_v54, %v997_v20  ;;  %v1094_v21 = vpop.f32.mrf.mxu3  ;;  %v998_v23 = vpop.f32.mrf.mxu1 }
  0xed   : > { %v999_v12 = vadd.f32 %v998_v23, %v949_v22 }
  0xee   : > { %v1095_v28 = vadd.f32 %v1094_v21, %v1046_v57 }
  0xf0   : > { %v1327_v29 = vadd.f32 %v1095_v28, %v2790_v18 }
  0xf2   : > { %1359 = vst [vmem:[%s2793_s26 + $0x60] sm:$0xff] %v1327_v29 }
  0xf3   : > { %v1047_v30 = vpop.f32.mrf.mxu2  ;;  %v952_v13 = vpop.f32.mrf.mxu0 }
  0xf4   : > { %v1048_v31 = vadd.f32 %v1047_v30, %v999_v12  ;;  %v1096_v32 = vpop.f32.mrf.mxu3  ;;  %v1001_v33 = vpop.f32.mrf.mxu1 }
  0xf5   : > { %v1002_v34 = vadd.f32 %v1001_v33, %v952_v13 }
  0xf6   : > { %v1097_v14 = vadd.f32 %v1096_v32, %v1048_v31  ;;  %1147 = vmatmul.bf16.gmra.mxu0 %v2657_v40 }
  0xf7   : > { %1196 = vmatmul.bf16.gmra.mxu1 %v2659_v41 }
  0xf8   : > { %v1329_v15 = vadd.f32 %v1097_v14, %v2790_v18  ;;  %1245 = vmatmul.bf16.gmra.mxu2 %v2661_v42 }
  0xf9   : > { %1294 = vmatmul.bf16.gmra.mxu3 %v2663_v43 }
  0xfa   : > { %1361 = vst [vmem:[%s2793_s26 + $0x70] sm:$0xff] %v1329_v15 }
  0xfb   : > { %v1050_v35 = vpop.f32.mrf.mxu2  ;;  %v954_v38 = vpop.f32.mrf.mxu0 }
  0xfc   : > { %v1051_v36 = vadd.f32 %v1050_v35, %v1002_v34  ;;  %v1099_v37 = vpop.f32.mrf.mxu3  ;;  %v1003_v39 = vpop.f32.mrf.mxu1 }
  0xfd   : > { %v1004_v40 = vadd.f32 %v1003_v39, %v954_v38  ;;  %v2855_v39 = vperm.slane %v2785_v7, 1 }
  0xfe   : > { %v1100_v24 = vadd.f32 %v1099_v37, %v1051_v36 }
 0x100   : > { %v1331_v55 = vadd.f32 %v1100_v24, %v2790_v18 }
 0x102   : > { %1363 = vst [vmem:[%s2793_s26 + $0x80] sm:$0xff] %v1331_v55 }
 0x103   : > { %v1052_v56 = vpop.f32.mrf.mxu2  ;;  %v957_v41 = vpop.f32.mrf.mxu0 }
 0x104   : > { %v1053_v58 = vadd.f32 %v1052_v56, %v1004_v40  ;;  %v1101_v25 = vpop.f32.mrf.mxu3  ;;  %v1006_v59 = vpop.f32.mrf.mxu1 }
 0x105   : > { %v1007_v26 = vadd.f32 %v1006_v59, %v957_v41 }
 0x106   : > { %v1102_v42 = vadd.f32 %v1101_v25, %v1053_v58  ;;  %1152 = vmatmul.bf16.gmra.mxu0 %v2701_v8 }
 0x107   : > { %1201 = vmatmul.bf16.gmra.mxu1 %v2703_v9 }
 0x108   : > { %v1333_v43 = vadd.f32 %v1102_v42, %v2790_v18  ;;  %1250 = vmatmul.bf16.gmra.mxu2 %v2705_v10 }
 0x109   : > { %1299 = vmatmul.bf16.gmra.mxu3 %v2707_v11 }
 0x10a   : > { %1365 = vst [vmem:[%s2793_s26 + $0x90] sm:$0xff] %v1333_v43 }
 0x10b   : > { %v1055_v27 = vpop.f32.mrf.mxu2  ;;  %v959_v62 = vpop.f32.mrf.mxu0 }
 0x10c   : > { %v1056_v60 = vadd.f32 %v1055_v27, %v1007_v26  ;;  %v1104_v61 = vpop.f32.mrf.mxu3  ;;  %v1008_v63 = vpop.f32.mrf.mxu1 }
 0x10d   : > { %v1009_v8 = vadd.f32 %v1008_v63, %v959_v62 }
 0x10e   : > { %v1105_v4 = vadd.f32 %v1104_v61, %v1056_v60 }
 0x110   : > { %v1335_v5 = vadd.f32 %v1105_v4, %v2790_v18 }
 0x112   : > { %1367 = vst [vmem:[%s2793_s26 + $0xa0] sm:$0xff] %v1335_v5 }
 0x113   : > { %v1057_v6 = vpop.f32.mrf.mxu2  ;;  %v962_v9 = vpop.f32.mrf.mxu0 }
 0x114   : > { %v1058_v16 = vadd.f32 %v1057_v6, %v1009_v8  ;;  %v1106_v49 = vpop.f32.mrf.mxu3  ;;  %v1011_v17 = vpop.f32.mrf.mxu1 }
 0x115   : > { %v1012_v48 = vadd.f32 %v1011_v17, %v962_v9 }
 0x116   : > { %v1107_v10 = vadd.f32 %v1106_v49, %v1058_v16  ;;  %1157 = vmatmul.bf16.gmra.mxu0 %v2745_v44 }
 0x117   : > { %1206 = vmatmul.bf16.gmra.mxu1 %v2747_v45 }
 0x118   : > { %v1337_v11 = vadd.f32 %v1107_v10, %v2790_v18  ;;  %1255 = vmatmul.bf16.gmra.mxu2 %v2749_v46 }
 0x119   : > { %1304 = vmatmul.bf16.gmra.mxu3 %v2751_v47 }
 0x11a   : > { %1369 = vst [vmem:[%s2793_s26 + $0xb0] sm:$0xff] %v1337_v11 }
 0x11b   : > { %v1060_v19 = vpop.f32.mrf.mxu2  ;;  %v964_v51 = vpop.f32.mrf.mxu0 }
 0x11c   : > { %v1061_v50 = vadd.f32 %v1060_v19, %v1012_v48  ;;  %v1109_v53 = vpop.f32.mrf.mxu3  ;;  %v1013_v52 = vpop.f32.mrf.mxu1 }
 0x11d   : > { %v1014_v44 = vadd.f32 %v1013_v52, %v964_v51 }
 0x11e   : > { %v1110_v20 = vadd.f32 %v1109_v53, %v1061_v50 }
 0x120   : > { %v1339_v54 = vadd.f32 %v1110_v20, %v2790_v18 }
 0x122   : > { %1371 = vst [vmem:[%s2793_s26 + $0xc0] sm:$0xff] %v1339_v54 }
 0x123   : > { %v1062_v57 = vpop.f32.mrf.mxu2  ;;  %v967_v45 = vpop.f32.mrf.mxu0 }
 0x124   : > { %v1063_v21 = vadd.f32 %v1062_v57, %v1014_v44  ;;  %v1111_v22 = vpop.f32.mrf.mxu3  ;;  %v1016_v23 = vpop.f32.mrf.mxu1 }
 0x125   : > { %v1017_v28 = vadd.f32 %v1016_v23, %v967_v45 }
 0x126   : > { %v1112_v46 = vadd.f32 %v1111_v22, %v1063_v21  ;;  %1162 = vmatmul.bf16.gmra.mxu0 %v2765_v0 }
 0x127   : > { %1211 = vmatmul.bf16.gmra.mxu1 %v2767_v1 }
 0x128   : > { %v1341_v47 = vadd.f32 %v1112_v46, %v2790_v18  ;;  %1260 = vmatmul.bf16.gmra.mxu2 %v2769_v2 }
 0x129   : > { %1309 = vmatmul.bf16.gmra.mxu3 %v2771_v3 }
 0x12a   : > { %1373 = vst [vmem:[%s2793_s26 + $0xd0] sm:$0xff] %v1341_v47 }
 0x12b   : > { %v1065_v29 = vpop.f32.mrf.mxu2  ;;  %v969_v31 = vpop.f32.mrf.mxu0 }
 0x12c   : > { %v1066_v12 = vadd.f32 %v1065_v29, %v1017_v28  ;;  %v1114_v30 = vpop.f32.mrf.mxu3  ;;  %v1018_v32 = vpop.f32.mrf.mxu1 }
 0x12d   : > { %v1019_v0 = vadd.f32 %v1018_v32, %v969_v31 }
 0x12e   : > { %v1115_v13 = vadd.f32 %v1114_v30, %v1066_v12 }
 0x130   : > { %v1343_v33 = vadd.f32 %v1115_v13, %v2790_v18 }
 0x132   : > { %1375 = vst [vmem:[%s2793_s26 + $0xe0] sm:$0xff] %v1343_v33 }
 0x133   : > { %v1067_v14 = vpop.f32.mrf.mxu2  ;;  %v1128_v34 = vpop.f32.mrf.mxu0 }
 0x134   : > { %v1068_v15 = vadd.f32 %v1067_v14, %v1019_v0  ;;  %v1116_v1 = vpop.f32.mrf.mxu3  ;;  %v1177_v2 = vpop.f32.mrf.mxu1 }
 0x135   : > { %v1178_v36 = vadd.f32 %v1177_v2, %v1128_v34 }
 0x136   : > { %v1117_v35 = vadd.f32 %v1116_v1, %v1068_v15 }
 0x138   : > { %v1345_v3 = vadd.f32 %v1117_v35, %v2790_v18 }
 0x13a   : > { %1377 = vst [vmem:[%s2793_s26 + $0xf0] sm:$0xff] %v1345_v3 }
 0x13b   : > { %v1226_v37 = vpop.f32.mrf.mxu2  ;;  %v1130_v55 = vpop.f32.mrf.mxu0 }
 0x13c   : > { %v1227_v38 = vadd.f32 %v1226_v37, %v1178_v36  ;;  %v1275_v24 = vpop.f32.mrf.mxu3  ;;  %v1179_v40 = vpop.f32.mrf.mxu1 }
 0x13d   : > { %v1180_v25 = vadd.f32 %v1179_v40, %v1130_v55 }
 0x13e   : > { %v1276_v56 = vadd.f32 %v1275_v24, %v1227_v38 }
 0x140   : > { %v1316_v58 = vadd.f32 %v1276_v56, %v2855_v39 }
 0x142   : > { %1348 = vst [vmem:[%s2793_s26 + $0x8] sm:$0xff] %v1316_v58 }
 0x143   : > { %v1228_v41 = vpop.f32.mrf.mxu2  ;;  %v1133_v42 = vpop.f32.mrf.mxu0 }
 0x144   : > { %v1229_v59 = vadd.f32 %v1228_v41, %v1180_v25  ;;  %v1277_v18 = vpop.f32.mrf.mxu3  ;;  %v1182_v43 = vpop.f32.mrf.mxu1 }
 0x145   : > { %v1183_v7 = vadd.f32 %v1182_v43, %v1133_v42 }
 0x146   : > { %v1278_v26 = vadd.f32 %v1277_v18, %v1229_v59 }
 0x148   : > { %v1318_v27 = vadd.f32 %v1278_v26, %v2855_v39 }
 0x14a   : > { %1350 = vst [vmem:[%s2793_s26 + $0x18] sm:$0xff] %v1318_v27 }
 0x14b   : > { %v1231_v60 = vpop.f32.mrf.mxu2  ;;  %v1135_v63 = vpop.f32.mrf.mxu0 }
 0x14c   : > { %v1232_v61 = vadd.f32 %v1231_v60, %v1183_v7  ;;  %v1280_v62 = vpop.f32.mrf.mxu3  ;;  %v1184_v4 = vpop.f32.mrf.mxu1 }
 0x14d   : > { %v1185_v6 = vadd.f32 %v1184_v4, %v1135_v63 }
 0x14e   : > { %v1281_v5 = vadd.f32 %v1280_v62, %v1232_v61 }
 0x150   : > { %v1320_v8 = vadd.f32 %v1281_v5, %v2855_v39 }
 0x152   : > { %1352 = vst [vmem:[%s2793_s26 + $0x28] sm:$0xff] %v1320_v8 }
 0x153   : > { %v1233_v16 = vpop.f32.mrf.mxu2  ;;  %v1138_v17 = vpop.f32.mrf.mxu0 }
 0x154   : > { %v1234_v49 = vadd.f32 %v1233_v16, %v1185_v6  ;;  %v1282_v9 = vpop.f32.mrf.mxu3  ;;  %v1187_v10 = vpop.f32.mrf.mxu1 }
 0x155   : > { %v1188_v19 = vadd.f32 %v1187_v10, %v1138_v17 }
 0x156   : > { %v1283_v11 = vadd.f32 %v1282_v9, %v1234_v49 }
 0x158   : > { %v1322_v48 = vadd.f32 %v1283_v11, %v2855_v39 }
 0x15a   : > { %1354 = vst [vmem:[%s2793_s26 + $0x38] sm:$0xff] %v1322_v48 }
 0x15b   : > { %v1236_v50 = vpop.f32.mrf.mxu2  ;;  %v1140_v52 = vpop.f32.mrf.mxu0 }
 0x15c   : > { %v1237_v53 = vadd.f32 %v1236_v50, %v1188_v19  ;;  %v1285_v51 = vpop.f32.mrf.mxu3  ;;  %v1189_v20 = vpop.f32.mrf.mxu1 }
 0x15d   : > { %v1190_v57 = vadd.f32 %v1189_v20, %v1140_v52 }
 0x15e   : > { %v1286_v54 = vadd.f32 %v1285_v51, %v1237_v53 }
 0x160   : > { %v1324_v44 = vadd.f32 %v1286_v54, %v2855_v39 }
 0x162   : > { %1356 = vst [vmem:[%s2793_s26 + $0x48] sm:$0xff] %v1324_v44 }
 0x163   : > { %v1238_v21 = vpop.f32.mrf.mxu2  ;;  %v1143_v23 = vpop.f32.mrf.mxu0 }
 0x164   : > { %v1239_v22 = vadd.f32 %v1238_v21, %v1190_v57  ;;  %v1287_v45 = vpop.f32.mrf.mxu3  ;;  %v1192_v46 = vpop.f32.mrf.mxu1 }
 0x165   : > { %v1193_v29 = vadd.f32 %v1192_v46, %v1143_v23 }
 0x166   : > { %v1288_v47 = vadd.f32 %v1287_v45, %v1239_v22 }
 0x168   : > { %v1326_v28 = vadd.f32 %v1288_v47, %v2855_v39 }
 0x16a   : > { %1358 = vst [vmem:[%s2793_s26 + $0x58] sm:$0xff] %v1326_v28 }
 0x16b   : > { %v1241_v12 = vpop.f32.mrf.mxu2  ;;  %v1145_v32 = vpop.f32.mrf.mxu0 }
 0x16c   : > { %v1242_v30 = vadd.f32 %v1241_v12, %v1193_v29  ;;  %v1290_v31 = vpop.f32.mrf.mxu3  ;;  %v1194_v13 = vpop.f32.mrf.mxu1 }
 0x16d   : > { %v1195_v14 = vadd.f32 %v1194_v13, %v1145_v32 }
 0x16e   : > { %v1291_v33 = vadd.f32 %v1290_v31, %v1242_v30 }
 0x170   : > { %v1328_v0 = vadd.f32 %v1291_v33, %v2855_v39 }
 0x172   : > { %1360 = vst [vmem:[%s2793_s26 + $0x68] sm:$0xff] %v1328_v0 }
 0x173   : > { %v1243_v15 = vpop.f32.mrf.mxu2  ;;  %v1148_v2 = vpop.f32.mrf.mxu0 }
 0x174   : > { %v1244_v1 = vadd.f32 %v1243_v15, %v1195_v14  ;;  %v1292_v34 = vpop.f32.mrf.mxu3  ;;  %v1197_v35 = vpop.f32.mrf.mxu1 }
 0x175   : > { %v1198_v37 = vadd.f32 %v1197_v35, %v1148_v2 }
 0x176   : > { %v1293_v3 = vadd.f32 %v1292_v34, %v1244_v1 }
 0x178   : > { %v1330_v36 = vadd.f32 %v1293_v3, %v2855_v39 }
 0x17a   : > { %1362 = vst [vmem:[%s2793_s26 + $0x78] sm:$0xff] %v1330_v36 }
 0x17b   : > { %v1246_v38 = vpop.f32.mrf.mxu2  ;;  %v1150_v40 = vpop.f32.mrf.mxu0 }
 0x17c   : > { %v1247_v24 = vadd.f32 %v1246_v38, %v1198_v37  ;;  %v1295_v55 = vpop.f32.mrf.mxu3  ;;  %v1199_v56 = vpop.f32.mrf.mxu1 }
 0x17d   : > { %v1200_v41 = vadd.f32 %v1199_v56, %v1150_v40 }
 0x17e   : > { %v1296_v58 = vadd.f32 %v1295_v55, %v1247_v24 }
 0x180   : > { %v1332_v25 = vadd.f32 %v1296_v58, %v2855_v39 }
 0x182   : > { %1364 = vst [vmem:[%s2793_s26 + $0x88] sm:$0xff] %v1332_v25 }
 0x183   : > { %v1248_v59 = vpop.f32.mrf.mxu2  ;;  %v1153_v43 = vpop.f32.mrf.mxu0 }
 0x184   : > { %v1249_v18 = vadd.f32 %v1248_v59, %v1200_v41  ;;  %v1297_v42 = vpop.f32.mrf.mxu3  ;;  %v1202_v26 = vpop.f32.mrf.mxu1 }
 0x185   : > { %v1203_v60 = vadd.f32 %v1202_v26, %v1153_v43 }
 0x186   : > { %v1298_v27 = vadd.f32 %v1297_v42, %v1249_v18 }
 0x188   : > { %v1334_v7 = vadd.f32 %v1298_v27, %v2855_v39 }
 0x18a   : > { %1366 = vst [vmem:[%s2793_s26 + $0x98] sm:$0xff] %v1334_v7 }
 0x18b   : > { %v1251_v61 = vpop.f32.mrf.mxu2  ;;  %v1155_v4 = vpop.f32.mrf.mxu0 }
 0x18c   : > { %v1252_v62 = vadd.f32 %v1251_v61, %v1203_v60  ;;  %v1300_v63 = vpop.f32.mrf.mxu3  ;;  %v1204_v5 = vpop.f32.mrf.mxu1 }
 0x18d   : > { %v1205_v16 = vadd.f32 %v1204_v5, %v1155_v4 }
 0x18e   : > { %v1301_v8 = vadd.f32 %v1300_v63, %v1252_v62 }
 0x190   : > { %v1336_v6 = vadd.f32 %v1301_v8, %v2855_v39 }
 0x192   : > { %1368 = vst [vmem:[%s2793_s26 + $0xa8] sm:$0xff] %v1336_v6 }
 0x193   : > { %v1253_v49 = vpop.f32.mrf.mxu2  ;;  %v1158_v10 = vpop.f32.mrf.mxu0 }
 0x194   : > { %v1254_v9 = vadd.f32 %v1253_v49, %v1205_v16  ;;  %v1302_v17 = vpop.f32.mrf.mxu3  ;;  %v1207_v11 = vpop.f32.mrf.mxu1 }
 0x195   : > { %v1208_v50 = vadd.f32 %v1207_v11, %v1158_v10 }
 0x196   : > { %v1303_v48 = vadd.f32 %v1302_v17, %v1254_v9 }
 0x198   : > { %v1338_v19 = vadd.f32 %v1303_v48, %v2855_v39 }
 0x19a   : > { %1370 = vst [vmem:[%s2793_s26 + $0xb8] sm:$0xff] %v1338_v19 }
 0x19b   : > { %v1256_v53 = vpop.f32.mrf.mxu2  ;;  %v1160_v20 = vpop.f32.mrf.mxu0 }
 0x19c   : > { %v1257_v51 = vadd.f32 %v1256_v53, %v1208_v50  ;;  %v1305_v52 = vpop.f32.mrf.mxu3  ;;  %v1209_v54 = vpop.f32.mrf.mxu1 }
 0x19d   : > { %v1210_v21 = vadd.f32 %v1209_v54, %v1160_v20 }
 0x19e   : > { %v1306_v44 = vadd.f32 %v1305_v52, %v1257_v51 }
 0x1a0   : > { %v1340_v57 = vadd.f32 %v1306_v44, %v2855_v39 }
 0x1a2   : > { %1372 = vst [vmem:[%s2793_s26 + $0xc8] sm:$0xff] %v1340_v57 }
 0x1a3   : > { %v1258_v22 = vpop.f32.mrf.mxu2  ;;  %v1163_v46 = vpop.f32.mrf.mxu0 }
 0x1a4   : > { %v1259_v45 = vadd.f32 %v1258_v22, %v1210_v21  ;;  %v1307_v23 = vpop.f32.mrf.mxu3  ;;  %v1212_v47 = vpop.f32.mrf.mxu1 }
 0x1a5   : > { %v1213_v12 = vadd.f32 %v1212_v47, %v1163_v46 }
 0x1a6   : > { %v1308_v28 = vadd.f32 %v1307_v23, %v1259_v45 }
 0x1a8   : > { %v1342_v29 = vadd.f32 %v1308_v28, %v2855_v39 }
 0x1aa   : > { %1374 = vst [vmem:[%s2793_s26 + $0xd8] sm:$0xff] %v1342_v29 }
 0x1ab   : > { %v1261_v30 = vpop.f32.mrf.mxu2  ;;  %v1165_v33 = vpop.f32.mrf.mxu0 }
 0x1ac   : > { %v1262_v31 = vadd.f32 %v1261_v30, %v1213_v12  ;;  %v1310_v32 = vpop.f32.mrf.mxu3  ;;  %v1214_v0 = vpop.f32.mrf.mxu1 }
 0x1ad   : > { %v1215_v15 = vadd.f32 %v1214_v0, %v1165_v33 }
 0x1ae   : > { %v1311_v13 = vadd.f32 %v1310_v32, %v1262_v31 }
 0x1b0   : > { %v1344_v14 = vadd.f32 %v1311_v13, %v2855_v39 }
 0x1b2   : > { %1376 = vst [vmem:[%s2793_s26 + $0xe8] sm:$0xff] %v1344_v14 }
 0x1b3   : > { %v1263_v1 = vpop.f32.mrf.mxu2 }
 0x1b4   : > { %v1264_v34 = vadd.f32 %v1263_v1, %v1215_v15  ;;  %v1312_v2 = vpop.f32.mrf.mxu3 }
 0x1b6   : > { %v1313_v35 = vadd.f32 %v1312_v2, %v1264_v34 }
 0x1b8   : > { %v1346_v3 = vadd.f32 %v1313_v35, %v2855_v39 }
 0x1ba   : > { %1378 = vst [vmem:[%s2793_s26 + $0xf8] sm:$0xff] %v1346_v3 }
 0x1bb   : > { %2097 = shalt.err (!%p2094_p5)
}
 0x1bc   : > { %s2150_s29 = smov 256   ;;  %s2151_s21 = smov 16  }
 0x1bd   : > { %2013 = dma.vmem_to_hbm [thread:$0]  (%p2212_p4), %s1396_s7, 4096, %s1398_s5, %s1380_s15, %s2150_s29, %s2150_s29, %s2151_s21  }
 0x1be PF: > { %p2019_p6 = scmp.ge.s32.totalorder %s2148_s17, 2  ;;  %s1412_s23 = sand.u32 1, %s2128_s12  }
 0x1bf   : > { %s1413_s26 = scalar_lea.sflag [#allocation3], %s1412_s23 }
 0x1c0   : > { %p2016_p7 = pnand %p2019_p6, %p2219_p8 }
 0x1c2   : > { %p2017_p9 = pneg %p2016_p7 }
 0x1c4   : > { %2123 = dma.done.wait (%p2017_p9), %s1413_s26, 4096  }
 0x1c5   : > { %2125 = vsyncadd (%p2017_p9), %s1413_s26, 4294963200  ;;  %s16_s17 = sadd.s32 1, %s2148_s17   ;;  %s2934_s12 = smov %s2132_s13 }
 0x1c6   : > { %p13_p10 = scmp.ge.s32.totalorder %s16_s17, 4   ;;  %s2935_s13 = smov %s2136_s14 }
 0x1c7   : > { %s2936_s14 = smov %s2225_s25  ;;  %s2937_s15 = smov %s2144_s16 }
 0x1c8   : > { %s2938_s16 = smov %s2940_s20  ;;  %15 = sbr.rel (!%p13_p10) target bundleno = 4 (0x4), region = 77 }
 0x1cd   :  { %1419 = vsyncpa [#allocation3], 1 }
 0x1ce   :  { %1421 = vsyncpa [#allocation3 + $0x1], 1 }

</bundles_post_ra>
